<compile_context>
chip_gen: v7x
topology: tpu7x:2x2x1
jax: 0.10.0
libtpu: 0.0.40
codegen_flags: <defaults>
</compile_context>

<pallas_src>
import functools

import jax
import jax.numpy as jnp
from jax.experimental import pallas as pl
from jax.experimental.pallas import tpu as pltpu


def _round_up(x, m):
    return ((x + m - 1) // m) * m


def _fused_stacked_lstm_kernel(x_ref, h0_ref, c0_ref, w_ref, b_ref,
                               h1_ref, c1_ref, xh_ref, hnext_ref,
                               *, d_max_p, hs, n_tiles):
    """Grid step == (batch tile, layer, gate tile).

    xh_ref layout along K (all lane-128 aligned):
      [0 : d_max_p]      layer input (padded x for layer 0, previous layer's h
                         in lanes [0:Hp] for layers > 0; extra lanes multiply
                         zero weight rows),
      [d_max_p : K]      this layer's h_0 (padded to Hp).
    hnext_ref (n_tiles, Bt, hs) stages this layer's h so the input slab is not
    overwritten while later gate tiles of the same layer still read it.
    """
    l = pl.program_id(1)
    n = pl.program_id(2)

    @pl.when((l == 0) & (n == 0))
    def _():
        # Layer-0 input: external x, zero-padded to d_max_p lanes.
        xh_ref[:, 0:d_max_p] = x_ref[...].astype(xh_ref.dtype)

    @pl.when((l > 0) & (n == 0))
    def _():
        # Previous layer's h becomes this layer's input (stays in VMEM).
        for t in range(n_tiles):                      # static unroll
            xh_ref[:, t * hs:(t + 1) * hs] = hnext_ref[t]

    @pl.when(n == 0)
    def _():
        # Recurrent half of the fused input: this layer's h_0.
        xh_ref[:, d_max_p:] = h0_ref[0].astype(xh_ref.dtype)

    # Single MXU matmul for this gate tile: (Bt, K) @ (K, 4*hs) -> f32.
    gates = jnp.dot(xh_ref[...], w_ref[0], preferred_element_type=jnp.float32)
    gates = gates + b_ref[0]                          # f32 bias, (1, 4*hs)

    # Gate-interleaved columns: [i | f | g | o] for this H-slice, hs each,
    # all slices lane-128 aligned.
    i_g = jax.nn.sigmoid(gates[:, 0 * hs:1 * hs])
    f_g = jax.nn.sigmoid(gates[:, 1 * hs:2 * hs])
    g_g = jnp.tanh(gates[:, 2 * hs:3 * hs])
    o_g = jax.nn.sigmoid(gates[:, 3 * hs:4 * hs])

    c_new = f_g * c0_ref[0].astype(jnp.float32) + i_g * g_g
    h_new = o_g * jnp.tanh(c_new)

    c1_ref[0] = c_new.astype(c1_ref.dtype)            # lane-dense stores
    h1_ref[0] = h_new.astype(h1_ref.dtype)

    # Stage h chunk for the next layer's input.
    hnext_ref[n] = h_new.astype(hnext_ref.dtype)


def prepare_stacked_lstm_params(params, input_size, rnn_size, *,
                                weight_dtype=jnp.float32,
                                max_weight_block_bytes=4 * 1024 * 1024):
    """One-time prep: pad to 128 lanes, fuse [W_ih; W_hh] along K, gate-interleave.

    Returns:
      w_cat: (L, K, 4*Hp) in weight_dtype, K = round_up(max(in, H),128) + Hp,
             column order per N-tile n: [i|f|g|o] for H-slice [n*hs:(n+1)*hs].
      b_cat: (L, 1, 4*Hp) float32 = b_ih + b_hh, same column order.
      hs:    hidden-slice width per gate tile (static; pass to the forward).
    """
    H = rnn_size
    Hp = _round_up(H, 128)
    d_max = max(input_size, rnn_size)
    d_max_p = _round_up(d_max, 128)
    K = d_max_p + Hp

    # Largest 128-multiple divisor of Hp whose weight block fits the budget
    # (keeps per-buffer weight DMA small enough to double-buffer on v7x).
    wbytes = jnp.dtype(weight_dtype).itemsize
    hs = 128
    for cand in range(128, Hp + 1, 128):
        if Hp % cand == 0 and K * 4 * cand * wbytes <= max_weight_block_bytes:
            hs = cand
    n_tiles = Hp // hs

    w_list, b_list = [], []
    d_in = input_size
    for (w_ih, w_hh, b_ih, b_hh) in params:
        w_full = jnp.zeros((K, 4, Hp), jnp.float32)
        wt = jnp.transpose(w_ih).astype(jnp.float32).reshape(d_in, 4, H)
        w_full = w_full.at[0:d_in, :, 0:H].set(wt)
        wh = jnp.transpose(w_hh).astype(jnp.float32).reshape(H, 4, H)
        w_full = w_full.at[d_max_p:d_max_p + H, :, 0:H].set(wh)
        # Interleave gates per N-tile: (K,4,NT,hs) -> (K,NT,4,hs) -> (K,4Hp).
        w_il = (w_full.reshape(K, 4, n_tiles, hs)
                .transpose(0, 2, 1, 3).reshape(K, 4 * Hp))
        w_list.append(w_il.astype(weight_dtype))

        b_full = jnp.zeros((4, Hp), jnp.float32)
        b_full = b_full.at[:, 0:H].set(
            (b_ih + b_hh).astype(jnp.float32).reshape(4, H))
        b_il = (b_full.reshape(4, n_tiles, hs)
                .transpose(1, 0, 2).reshape(1, 4 * Hp))
        b_list.append(b_il)                           # bias stays f32

        d_in = rnn_size

    return jnp.stack(w_list), jnp.stack(b_list), hs


@functools.partial(jax.jit, static_argnames=("hs", "max_batch_tile"))
def stacked_lstm_forward(w_cat, b_cat, x, h_0, c_0, *, hs, max_batch_tile=256):
    """Mirror of StackedLSTM.forward (eval mode).

    x: (B, input_size); h_0/c_0: (L, B, H); w_cat/b_cat/hs from the prepare step.
    Returns (output, (h_1, c_1)).
    """
    L, K, four_hp = w_cat.shape
    Hp = four_hp // 4
    d_max_p = K - Hp
    n_tiles = Hp // hs
    B, d_in = x.shape
    H = h_0.shape[-1]

    # Batch tiling: sublane-full, optionally split across tiles (parallel axis).
    Bt = _round_up(min(int(max_batch_tile), _round_up(B, 8)), 8)
    Bp = _round_up(B, Bt)
    n_b = Bp // Bt

    dt = x.dtype
    cdt = w_cat.dtype            # compute / scratch dtype follows the weights

    x_p = jnp.zeros((Bp, d_max_p), dt).at[:B, :d_in].set(x)
    h0_p = jnp.zeros((L, Bp, Hp), dt).at[:, :B, :H].set(h_0)
    c0_p = jnp.zeros((L, Bp, Hp), dt).at[:, :B, :H].set(c_0)

    kernel = functools.partial(_fused_stacked_lstm_kernel,
                               d_max_p=d_max_p, hs=hs, n_tiles=n_tiles)

    # Explicit VMEM budget: 2x (all double-buffered blocks) + scratch + headroom.
    iob = jnp.dtype(dt).itemsize
    wb = jnp.dtype(cdt).itemsize
    blk = (Bt * d_max_p * iob            # x block
           + Bt * Hp * iob               # h0 block
           + Bt * hs * iob               # c0 block
           + K * 4 * hs * wb             # weight block
           + 4 * hs * 4                  # bias block (f32)
           + 2 * Bt * hs * iob)          # h1 + c1 out blocks
    vmem = (2 * blk
            + Bt * K * wb + n_tiles * Bt * hs * wb   # xh + hnext scratch
            + 8 * Bt * 4 * hs * 4                    # gates/temporary headroom
            + (2 << 20))
    vmem_limit = int(min(max(vmem, 32 << 20), 128 << 20))

    h1_p, c1_p = pl.pallas_call(
        kernel,
        out_shape=(jax.ShapeDtypeStruct((L, Bp, Hp), dt),
                   jax.ShapeDtypeStruct((L, Bp, Hp), dt)),
        grid_spec=pltpu.PrefetchScalarGridSpec(
            num_scalar_prefetch=0,
            grid=(n_b, L, n_tiles),
            in_specs=[
                pl.BlockSpec((Bt, d_max_p), lambda b, l, n: (b, 0)),     # x
                pl.BlockSpec((1, Bt, Hp), lambda b, l, n: (l, b, 0)),    # h_0[l]
                pl.BlockSpec((1, Bt, hs), lambda b, l, n: (l, b, n)),    # c_0[l]
                pl.BlockSpec((1, K, 4 * hs), lambda b, l, n: (l, 0, n)),  # W tile
                pl.BlockSpec((1, 1, 4 * hs), lambda b, l, n: (l, 0, n)),  # b tile
            ],
            out_specs=(
                pl.BlockSpec((1, Bt, hs), lambda b, l, n: (l, b, n)),    # h_1
                pl.BlockSpec((1, Bt, hs), lambda b, l, n: (l, b, n)),    # c_1
            ),
            scratch_shapes=[
                pltpu.VMEM((Bt, K), cdt),            # fused [input | h_0] slab
                pltpu.VMEM((n_tiles, Bt, hs), cdt),  # staged h for next layer
            ],
        ),
        compiler_params=pltpu.CompilerParams(
            dimension_semantics=("parallel", "arbitrary", "arbitrary"),
            vmem_limit_bytes=vmem_limit),
    )(x_p, h0_p, c0_p, w_cat, b_cat)

    h_1 = h1_p[:, :B, :H]
    c_1 = c1_p[:, :B, :H]
    # self.dropout(input): identity in eval mode (deterministic forward).
    return h_1[-1], (h_1, c_1)


def init_stacked_lstm_params(key, num_layers, input_size, rnn_size,
                             dtype=jnp.float32):
    """Deterministic parameter init matching nn.LSTMCell shapes."""
    params = []
    bound = 1.0 / jnp.sqrt(jnp.asarray(rnn_size, jnp.float32))
    d_in = input_size
    for _ in range(num_layers):
        key, k1, k2, k3, k4 = jax.random.split(key, 5)
        w_ih = jax.random.uniform(k1, (4 * rnn_size, d_in), dtype, -bound, bound)
        w_hh = jax.random.uniform(k2, (4 * rnn_size, rnn_size), dtype, -bound, bound)
        b_ih = jax.random.uniform(k3, (4 * rnn_size,), dtype, -bound, bound)
        b_hh = jax.random.uniform(k4, (4 * rnn_size,), dtype, -bound, bound)
        params.append((w_ih, w_hh, b_ih, b_hh))
        d_in = rnn_size
    return params


def _ref_forward(params, x, h_0, c_0):
    """Pure-JAX reference of the stacked LSTMCell math (PyTorch gate order)."""
    def cell(x, h, c, w_ih, w_hh, b_ih, b_hh):
        g = x @ w_ih.T + b_ih + h @ w_hh.T + b_hh
        H = h.shape[-1]
        i = jax.nn.sigmoid(g[:, :H])
        f = jax.nn.sigmoid(g[:, H:2 * H])
        gg = jnp.tanh(g[:, 2 * H:3 * H])
        o = jax.nn.sigmoid(g[:, 3 * H:])
        c_n = f * c + i * gg
        return o * jnp.tanh(c_n), c_n

    inp = x
    hs_, cs_ = [], []
    for i, p in enumerate(params):
        hh, cc = cell(inp, h_0[i], c_0[i], *p)
        inp = hh
        hs_.append(hh)
        cs_.append(cc)
    return inp, jnp.stack(hs_), jnp.stack(cs_)


if __name__ == "__main__":
    key = jax.random.PRNGKey(0)

    # ---------- Variant A: small f32 path (1 batch tile, 1 gate tile) ----------
    L, D, H, B = 2, 16, 32, 4
    key, kx, kh, kc, kp = jax.random.split(key, 5)
    x = jax.random.normal(kx, (B, D), jnp.float32)
    h_0 = jax.random.normal(kh, (L, B, H), jnp.float32)
    c_0 = jax.random.normal(kc, (L, B, H), jnp.float32)
    params = init_stacked_lstm_params(kp, L, D, H)

    w_cat, b_cat, hs = prepare_stacked_lstm_params(params, D, H)
    out, (h_1, c_1) = stacked_lstm_forward(w_cat, b_cat, x, h_0, c_0, hs=hs)
    jax.block_until_ready((out, h_1, c_1))

    assert out.shape == (B, H)
    assert h_1.shape == (L, B, H) and c_1.shape == (L, B, H)

    ref_out, ref_h, ref_c = _ref_forward(params, x, h_0, c_0)
    assert jnp.allclose(out, ref_out, atol=1e-4, rtol=1e-4)
    assert jnp.allclose(h_1, ref_h, atol=1e-4, rtol=1e-4)
    assert jnp.allclose(c_1, ref_c, atol=1e-4, rtol=1e-4)

    # ---- Variant B: bf16 weights, forced gate tiling (NT=2) + batch tiling ----
    L, D, H, B = 3, 48, 256, 12
    key, kx, kh, kc, kp = jax.random.split(key, 5)
    x = jax.random.normal(kx, (B, D), jnp.float32)
    h_0 = jax.random.normal(kh, (L, B, H), jnp.float32)
    c_0 = jax.random.normal(kc, (L, B, H), jnp.float32)
    params = init_stacked_lstm_params(kp, L, D, H)

    w_cat, b_cat, hs = prepare_stacked_lstm_params(
        params, D, H, weight_dtype=jnp.bfloat16,
        max_weight_block_bytes=600 * 1024)            # forces 2 gate tiles
    out, (h_1, c_1) = stacked_lstm_forward(w_cat, b_cat, x, h_0, c_0,
                                           hs=hs, max_batch_tile=8)  # 2 batch tiles
    jax.block_until_ready((out, h_1, c_1))

    # Reference with bf16-rounded weights (biases stay f32, like the kernel).
    params_bf = [
        (jnp.asarray(w_ih, jnp.bfloat16).astype(jnp.float32),
         jnp.asarray(w_hh, jnp.bfloat16).astype(jnp.float32),
         b_ih, b_hh)
        for (w_ih, w_hh, b_ih, b_hh) in params
    ]
    ref_out, ref_h, ref_c = _ref_forward(params_bf, x, h_0, c_0)
    assert jnp.allclose(out, ref_out, atol=3e-2, rtol=3e-2)
    assert jnp.allclose(h_1, ref_h, atol=3e-2, rtol=3e-2)
    assert jnp.allclose(c_1, ref_c, atol=3e-2, rtol=3e-2)

    print("KERNEL_OK")
</pallas_src>

<mosaic_0001>
module attributes {stable_mosaic.version = 11 : i64} {
  func.func @_fused_stacked_lstm_kernel(%arg0: i32, %arg1: i32, %arg2: i32, %arg3: memref<8x128xf32, #tpu.memory_space<vmem>>, %arg4: memref<1x8x128xf32, #tpu.memory_space<vmem>>, %arg5: memref<1x8x128xf32, #tpu.memory_space<vmem>>, %arg6: memref<1x256x512xf32, #tpu.memory_space<vmem>>, %arg7: memref<1x1x512xf32, #tpu.memory_space<vmem>>, %arg8: memref<1x8x128xf32, #tpu.memory_space<vmem>>, %arg9: memref<1x8x128xf32, #tpu.memory_space<vmem>>, %arg10: memref<8x256xf32, #tpu.memory_space<vmem>>, %arg11: memref<1x8x128xf32, #tpu.memory_space<vmem>>) attributes {dimension_semantics = [#tpu.dimension_semantics<parallel>, #tpu.dimension_semantics<arbitrary>, #tpu.dimension_semantics<arbitrary>], iteration_bounds = array<i64: 1, 2, 1>, scalar_prefetch = 0 : i64, scratch_operands = 2 : i64, tpu.core_type = #tpu.core_type<tc>, window_params = [{transform_indices = @transform_0, window_bounds = array<i64: 8, 128>}, {transform_indices = @transform_1, window_bounds = array<i64: 1, 8, 128>}, {transform_indices = @transform_2, window_bounds = array<i64: 1, 8, 128>}, {transform_indices = @transform_3, window_bounds = array<i64: 1, 256, 512>}, {transform_indices = @transform_4, window_bounds = array<i64: 1, 1, 512>}, {transform_indices = @transform_5, window_bounds = array<i64: 1, 8, 128>}, {transform_indices = @transform_6, window_bounds = array<i64: 1, 8, 128>}]} {
    %c0_i32 = arith.constant 0 : i32
    %0 = arith.cmpi eq, %arg1, %c0_i32 : i32
    %c0_i32_0 = arith.constant 0 : i32
    %1 = arith.cmpi eq, %arg2, %c0_i32_0 : i32
    %2 = arith.andi %0, %1 : i1
    %3 = arith.extui %2 : i1 to i32
    %c0_i32_1 = arith.constant 0 : i32
    %4 = arith.cmpi ne, %3, %c0_i32_1 : i32
    scf.if %4 {
      %c0_28 = arith.constant 0 : index
      %c0_29 = arith.constant 0 : index
      %58 = vector.load %arg3[%c0_28, %c0_29] : memref<8x128xf32, #tpu.memory_space<vmem>>, vector<8x128xf32>
      %c0_30 = arith.constant 0 : index
      %c0_31 = arith.constant 0 : index
      %59 = vector.load %arg10[%c0_30, %c0_31] : memref<8x256xf32, #tpu.memory_space<vmem>>, vector<8x128xf32>
      tpu.vector_store %arg10[%c0_30, %c0_31], %58 {strides = array<i32>} : memref<8x256xf32, #tpu.memory_space<vmem>>, vector<8x128xf32>,
    } else {
    }
    %c0_i32_2 = arith.constant 0 : i32
    %5 = arith.cmpi sgt, %arg1, %c0_i32_2 : i32
    %c0_i32_3 = arith.constant 0 : i32
    %6 = arith.cmpi eq, %arg2, %c0_i32_3 : i32
    %7 = arith.andi %5, %6 : i1
    %8 = arith.extui %7 : i1 to i32
    %c0_i32_4 = arith.constant 0 : i32
    %9 = arith.cmpi ne, %8, %c0_i32_4 : i32
    scf.if %9 {
      %c0_28 = arith.constant 0 : index
      %c0_29 = arith.constant 0 : index
      %c0_30 = arith.constant 0 : index
      %58 = vector.load %arg11[%c0_28, %c0_29, %c0_30] : memref<1x8x128xf32, #tpu.memory_space<vmem>>, vector<1x8x128xf32>
      %59 = vector.shape_cast %58 : vector<1x8x128xf32> to vector<8x128xf32>
      %c0_31 = arith.constant 0 : index
      %c0_32 = arith.constant 0 : index
      %60 = vector.load %arg10[%c0_31, %c0_32] : memref<8x256xf32, #tpu.memory_space<vmem>>, vector<8x128xf32>
      tpu.vector_store %arg10[%c0_31, %c0_32], %59 {strides = array<i32>} : memref<8x256xf32, #tpu.memory_space<vmem>>, vector<8x128xf32>,
    } else {
    }
    %c0_i32_5 = arith.constant 0 : i32
    %10 = arith.cmpi eq, %arg2, %c0_i32_5 : i32
    %11 = arith.extui %10 : i1 to i32
    %c0_i32_6 = arith.constant 0 : i32
    %12 = arith.cmpi ne, %11, %c0_i32_6 : i32
    scf.if %12 {
      %c0_28 = arith.constant 0 : index
      %c0_29 = arith.constant 0 : index
      %c0_30 = arith.constant 0 : index
      %58 = vector.load %arg4[%c0_28, %c0_29, %c0_30] : memref<1x8x128xf32, #tpu.memory_space<vmem>>, vector<1x8x128xf32>
      %59 = vector.shape_cast %58 : vector<1x8x128xf32> to vector<8x128xf32>
      %c0_31 = arith.constant 0 : index
      %c128 = arith.constant 128 : index
      %60 = vector.load %arg10[%c0_31, %c128] : memref<8x256xf32, #tpu.memory_space<vmem>>, vector<8x128xf32>
      tpu.vector_store %arg10[%c0_31, %c128], %59 {strides = array<i32>} : memref<8x256xf32, #tpu.memory_space<vmem>>, vector<8x128xf32>,
    } else {
    }
    %c0 = arith.constant 0 : index
    %c0_7 = arith.constant 0 : index
    %13 = vector.load %arg10[%c0, %c0_7] : memref<8x256xf32, #tpu.memory_space<vmem>>, vector<8x256xf32>
    %c0_8 = arith.constant 0 : index
    %c0_9 = arith.constant 0 : index
    %c0_10 = arith.constant 0 : index
    %14 = vector.load %arg6[%c0_8, %c0_9, %c0_10] : memref<1x256x512xf32, #tpu.memory_space<vmem>>, vector<1x256x512xf32>
    %15 = vector.shape_cast %14 : vector<1x256x512xf32> to vector<256x512xf32>
    %cst = arith.constant dense<0.000000e+00> : vector<8x512xf32>
    %16 = tpu.matmul %13, %15, %cst {dimension_numbers = #tpu.dot_dimension_numbers<[1], [0], [0], [1], [0, 0, 1, 1], [], []>} : vector<8x256xf32>, vector<256x512xf32>, vector<8x512xf32> -> vector<8x512xf32>
    %c0_11 = arith.constant 0 : index
    %c0_12 = arith.constant 0 : index
    %c0_13 = arith.constant 0 : index
    %17 = vector.load %arg7[%c0_11, %c0_12, %c0_13] : memref<1x1x512xf32, #tpu.memory_space<vmem>>, vector<1x1x512xf32>
    %18 = vector.shape_cast %17 : vector<1x1x512xf32> to vector<1x512xf32>
    %19 = vector.broadcast %18 : vector<1x512xf32> to vector<8x512xf32>
    %20 = arith.addf %16, %19 : vector<8x512xf32>
    %21 = vector.extract_strided_slice %20 {offsets = [0, 0], sizes = [8, 128], strides = [1, 1]} : vector<8x512xf32> to vector<8x128xf32>
    %22 = arith.negf %21 : vector<8x128xf32>
    %23 = math.exp %22 : vector<8x128xf32>
    %cst_14 = arith.constant 1.000000e+00 : f32
    %24 = vector.broadcast %cst_14 : f32 to vector<8x128xf32>
    %25 = arith.addf %24, %23 : vector<8x128xf32>
    %26 = arith.divf %24, %25 : vector<8x128xf32>
    %27 = vector.extract_strided_slice %20 {offsets = [0, 128], sizes = [8, 128], strides = [1, 1]} : vector<8x512xf32> to vector<8x128xf32>
    %28 = arith.negf %27 : vector<8x128xf32>
    %29 = math.exp %28 : vector<8x128xf32>
    %cst_15 = arith.constant 1.000000e+00 : f32
    %30 = vector.broadcast %cst_15 : f32 to vector<8x128xf32>
    %31 = arith.addf %30, %29 : vector<8x128xf32>
    %32 = arith.divf %30, %31 : vector<8x128xf32>
    %33 = vector.extract_strided_slice %20 {offsets = [0, 256], sizes = [8, 128], strides = [1, 1]} : vector<8x512xf32> to vector<8x128xf32>
    %34 = math.tanh %33 : vector<8x128xf32>
    %35 = vector.extract_strided_slice %20 {offsets = [0, 384], sizes = [8, 128], strides = [1, 1]} : vector<8x512xf32> to vector<8x128xf32>
    %36 = arith.negf %35 : vector<8x128xf32>
    %37 = math.exp %36 : vector<8x128xf32>
    %cst_16 = arith.constant 1.000000e+00 : f32
    %38 = vector.broadcast %cst_16 : f32 to vector<8x128xf32>
    %39 = arith.addf %38, %37 : vector<8x128xf32>
    %40 = arith.divf %38, %39 : vector<8x128xf32>
    %c0_17 = arith.constant 0 : index
    %c0_18 = arith.constant 0 : index
    %c0_19 = arith.constant 0 : index
    %41 = vector.load %arg5[%c0_17, %c0_18, %c0_19] : memref<1x8x128xf32, #tpu.memory_space<vmem>>, vector<1x8x128xf32>
    %42 = vector.shape_cast %41 : vector<1x8x128xf32> to vector<8x128xf32>
    %43 = arith.mulf %32, %42 : vector<8x128xf32>
    %44 = arith.mulf %26, %34 : vector<8x128xf32>
    %45 = arith.addf %43, %44 : vector<8x128xf32>
    %46 = math.tanh %45 : vector<8x128xf32>
    %47 = arith.mulf %40, %46 : vector<8x128xf32>
    %c0_20 = arith.constant 0 : index
    %c0_21 = arith.constant 0 : index
    %c0_22 = arith.constant 0 : index
    %48 = vector.load %arg9[%c0_20, %c0_21, %c0_22] : memref<1x8x128xf32, #tpu.memory_space<vmem>>, vector<1x8x128xf32>
    %49 = vector.shape_cast %48 : vector<1x8x128xf32> to vector<8x128xf32>
    %50 = vector.shape_cast %45 : vector<8x128xf32> to vector<1x8x128xf32>
    tpu.vector_store %arg9[%c0_20, %c0_21, %c0_22], %50 {strides = array<i32>} : memref<1x8x128xf32, #tpu.memory_space<vmem>>, vector<1x8x128xf32>,
    %c0_23 = arith.constant 0 : index
    %c0_24 = arith.constant 0 : index
    %c0_25 = arith.constant 0 : index
    %51 = vector.load %arg8[%c0_23, %c0_24, %c0_25] : memref<1x8x128xf32, #tpu.memory_space<vmem>>, vector<1x8x128xf32>
    %52 = vector.shape_cast %51 : vector<1x8x128xf32> to vector<8x128xf32>
    %53 = vector.shape_cast %47 : vector<8x128xf32> to vector<1x8x128xf32>
    tpu.vector_store %arg8[%c0_23, %c0_24, %c0_25], %53 {strides = array<i32>} : memref<1x8x128xf32, #tpu.memory_space<vmem>>, vector<1x8x128xf32>,
    %54 = arith.index_cast %arg2 : i32 to index
    %c0_26 = arith.constant 0 : index
    %c0_27 = arith.constant 0 : index
    %55 = vector.load %arg11[%54, %c0_26, %c0_27] : memref<1x8x128xf32, #tpu.memory_space<vmem>>, vector<1x8x128xf32>
    %56 = vector.shape_cast %55 : vector<1x8x128xf32> to vector<8x128xf32>
    %57 = vector.shape_cast %47 : vector<8x128xf32> to vector<1x8x128xf32>
    tpu.vector_store %arg11[%54, %c0_26, %c0_27], %57 {strides = array<i32>} : memref<1x8x128xf32, #tpu.memory_space<vmem>>, vector<1x8x128xf32>,
    return
  }
  func.func @transform_0(%arg0: i32, %arg1: i32, %arg2: i32) -> (i32, i32) {
    %c0_i32 = arith.constant 0 : i32
    %c0_i32_0 = arith.constant 0 : i32
    return %arg0, %c0_i32 : i32, i32
  }
  func.func @transform_1(%arg0: i32, %arg1: i32, %arg2: i32) -> (i32, i32, i32) {
    %c0_i32 = arith.constant 0 : i32
    %c0_i32_0 = arith.constant 0 : i32
    return %arg1, %arg0, %c0_i32 : i32, i32, i32
  }
  func.func @transform_2(%arg0: i32, %arg1: i32, %arg2: i32) -> (i32, i32, i32) {
    %c0_i32 = arith.constant 0 : i32
    return %arg1, %arg0, %arg2 : i32, i32, i32
  }
  func.func @transform_3(%arg0: i32, %arg1: i32, %arg2: i32) -> (i32, i32, i32) {
    %c0_i32 = arith.constant 0 : i32
    %c0_i32_0 = arith.constant 0 : i32
    return %arg1, %c0_i32, %arg2 : i32, i32, i32
  }
  func.func @transform_4(%arg0: i32, %arg1: i32, %arg2: i32) -> (i32, i32, i32) {
    %c0_i32 = arith.constant 0 : i32
    %c0_i32_0 = arith.constant 0 : i32
    return %arg1, %c0_i32, %arg2 : i32, i32, i32
  }
  func.func @transform_5(%arg0: i32, %arg1: i32, %arg2: i32) -> (i32, i32, i32) {
    %c0_i32 = arith.constant 0 : i32
    return %arg1, %arg0, %arg2 : i32, i32, i32
  }
  func.func @transform_6(%arg0: i32, %arg1: i32, %arg2: i32) -> (i32, i32, i32) {
    %c0_i32 = arith.constant 0 : i32
    return %arg1, %arg0, %arg2 : i32, i32, i32
  }
}

</mosaic_0001>

<bundles_post_ra>
// kernel: stacked_lstm_forward.1
= control target key start
LH: loop header
LB: loop body
LE: loop exit
PB: predicated region body
PF: predicated region fallthrough
CT: control target
= control target key end

     0   :  { %s1659_s0 = inlined_call_operand.vmem [shape: f32[8,128], index: 0, kind: input, shape index: {}]   ;;  %s1660_s1 = inlined_call_operand.vmem [shape: f32[2,8,128], index: 1, kind: input, shape index: {}]   ;;  %s1661_s2 = inlined_call_operand.vmem [shape: f32[2,8,128], index: 2, kind: input, shape index: {}]   ;;  %s1662_s3 = inlined_call_operand.hbm [shape: f32[2,256,512], index: 3, kind: input, shape index: {}]   ;;  %s1663_s4 = inlined_call_operand.vmem [shape: f32[2,1,512], index: 4, kind: input, shape index: {}]   ;;  %s1664_s5 = inlined_call_operand.vmem [shape: f32[2,8,128], index: 5, kind: output, shape index: {0}]   ;;  %s1665_s6 = inlined_call_operand.vmem [shape: f32[2,8,128], index: 6, kind: output, shape index: {1}]  }
   0x1   :  { %1666 = sst [smem:[#allocation7_spill]] %s1662_s3 }
   0x2   :  { %12 = vsyncpa [#allocation5], 0 }
   0x3   :  { %14 = vsyncpa [#allocation5 + $0x1], 0  ;;  %s1359_s21 = smov 0   ;;  %s1361_s22 = smov 0  }
   0x4   :  { %s1363_s23 = smov 0   ;;  %s1365_s24 = smov 0  }
   0x5   :  { %s1367_s25 = smov 0   ;;  %s1369_s26 = smov 0  }
   0x6 LB: > { %s1013_s27 = sadd.s32 4294967295, %s1319_s26   ;;  %s35_s28 = sadd.s32 1, %s1315_s25  ;;  %s1319_s26 = sphi %s1369_s26, %s20_s26   ;;  %s1315_s25 = sphi %s1367_s25, %s1675_s25   ;;  %s1311_s24 = sphi %s1365_s24, %s1674_s24   ;;  %s1307_s23 = sphi %s1363_s23, %s1673_s23   ;;  %s1303_s22 = sphi %s1361_s22, %s1672_s22   ;;  %s1299_s21 = sphi %s1359_s21, %s1671_s21  }
   0x7   : > { %p37_p0 = scmp.ge.s32.totalorder %s35_s28, 2  ;;  %s132_s29 = sadd.s32 1, %s1307_s23 }
   0x8   : > { %p139_p1 = scmp.ne.s32.totalorder %s1307_s23, %s1303_s22  ;;  %p140_p2 = scmp.eq.s32.totalorder %s1319_s26, 0 }
   0x9   : > { %s1677_s28 = smov (%p37_p0, %s35_s28), 0  ;;  %p145_p4 = scmp.ne.s32.totalorder %s1303_s22, %s1299_s21 }
   0xa   : > { %p1395_p3 = por %p140_p2, %p139_p1  ;;  %s127_s7 = ssub.s32 %s1315_s25, %s1677_s28 }
   0xb   : > { %p146_p5 = scmp.eq.s32.totalorder %s1013_s27, 0  ;;  %p130_p6 = scmp.eq.s32.totalorder %s127_s7, 0 }
   0xc   : > { %p1172_p8 = scmp.lt.s32.totalorder %s1319_s26, 2  ;;  %s287_s10 = sand.u32 1, %s1307_s23  }
   0xd   : > { %p1402_p7 = por %p146_p5, %p145_p4  ;;  %s1035_s11 = sshll.u32 %s1315_s25, 14 }
   0xe   : > { %s1408_s9 = scalar_select %p130_p6, %s1307_s23, %s132_s29  }
   0xf   : > { %s1018_s12 = sshll.u32 %s287_s10, 10  ;;  %s1669_s3 = sld [smem:[#allocation7_spill]] }
  0x10   : > { %s291_s16 = scalar_lea.vmem [#allocation4], %s1018_s12  ;;  %p1419_p9 = pnand %p1172_p8, %p1395_p3 }
  0x11   : > { %s300_s17 = sshll.u32 %s291_s16, 4  ;;  %s1425_s19 = scalar_lea.sflag [#allocation5], %s287_s10  ;;  %s1423_s17 = int_to_ptr.vmem [resolvable:$true] %s300_s17 }
  0x12   : > { %p1241_p11 = pneg %p1419_p9 }
  0x15   : > { %s1415_s15 = scalar_lea.hbm %s1669_s3, %s1035_s11  ;;  %s1244_s29 = scalar_lea.hbm %s1669_s3, 32768 }
  0x16   : > { %s1239_s20 = scalar_lea.hbm %s1415_s15, 16384  ;;  %p1245_p0 = scmp.lt.u32.totalorder %s1415_s15, %s1669_s3 }
  0x17   : > { %p1240_p10 = scmp.ne.s32.totalorder %s1415_s15, %s1239_s20  ;;  %p1246_p1 = scmp.lt.u32.totalorder %s1244_s29, %s1239_s20 }
  0x18   : > { %p1248_p3 = scmp.lt.u32.totalorder %s1239_s20, %s1415_s15 }
  0x19   : > { %p1242_p12 = pnand %p1241_p11, %p1240_p10  ;;  %p1247_p2 = por %p1246_p1, %p1245_p0 }
  0x1b   : > { %p1243_p13 = pneg %p1242_p12  ;;  %p1249_p4 = por %p1248_p3, %p1247_p2 }
  0x1d   : > { %p1250_p5 = pnand %p1249_p4, %p1243_p13 }
  0x1f   : > { %1253 = shalt.err (!%p1250_p5)
}
  0x20   : > { %s1254_s10 = scalar_lea.vmem %s1423_s17, 16384  ;;  %s1321_s11 = smov [#allocation4]  }
  0x21   : > { %p1255_p6 = scmp.ne.s32.totalorder %s1423_s17, %s1254_s10  ;;  %s1259_s12 = sshll.u32 %s1321_s11, 4  ;;  %s1260_s12 = int_to_ptr.vmem [resolvable:$false] %s1259_s12 }
  0x22   : > { %s1261_s13 = scalar_lea.vmem %s1260_s12, 32768  ;;  %p1262_p12 = scmp.lt.s32.totalorder %s1423_s17, %s1260_s12 }
  0x23   : > { %p1257_p8 = pnand %p1255_p6, %p1241_p11  ;;  %p1263_p0 = scmp.lt.s32.totalorder %s1261_s13, %s1254_s10 }
  0x25   : > { %p1258_p10 = pneg %p1257_p8  ;;  %p1264_p1 = por %p1263_p0, %p1262_p12 }
  0x27   : > { %p1265_p2 = pnand %p1264_p1, %p1258_p10 }
  0x29   : > { %1268 = shalt.err (!%p1265_p2)
}
  0x2a   : > { %s1322_s14 = smov 512   ;;  %s1323_s16 = smov 32  }
  0x2b   : > { %1171 = dma.hbm_to_vmem [thread:$0]  (!%p1419_p9), %s1415_s15, 16384, %s1423_s17, %s1425_s19, %s1322_s14, %s1322_s14, %s1323_s16  }
  0x2c   : > { %p1021_p11 = scmp.ge.s32.totalorder %s1319_s26, 1  ;;  %p320_p13 = scmp.lt.s32.totalorder %s1319_s26, 3 }
  0x2e   : > { %p321_p3 = pnand %p1021_p11, %p320_p13 }
  0x2f   : > { %s326_s20 = sand.u32 (!%p321_p3), 1, %s1303_s22  }
  0x30   : > { %324 = sbr.rel (%p321_p3) target bundleno = 402 (0x192), region = 40  ;;  %s1022_s21 = sshll.u32 (!%p321_p3), %s326_s20, 10 }
  0x31   : > { %s327_s27 = scalar_lea.sflag (!%p321_p3), [#allocation5], %s326_s20  ;;  %s1456_s29 = scalar_lea.vmem (!%p321_p3), [#allocation4], %s1022_s21 }
  0x37   : > { %1294 = dma.done.wait (%p1402_p7), %s327_s27, 16384  }
  0x38   : > { %1296 = vsyncadd (%p1402_p7), %s327_s27, 4294950912  ;;  %p407_p9 = scmp.lt.s32.totalorder %s1311_s24, 1  ;;  %p454_p4 = scmp.eq.s32.totalorder %s1311_s24, 0 }
  0x39   : > { %v460_v0 = vld [vmem:[%s1659_s0] sm:$0xff] (%p454_p4) }
  0x3a   : > { %s408_s15 = scalar_select %p407_p9, %s1311_s24, 1 }
  0x3b   : > { %459 = sbr.rel (!%p454_p4) target bundleno = 66 (0x42), region = 48  ;;  %461 = vst [vmem:[#allocation2] sm:$0xff] (%p454_p4), %v460_v0 }
  0x3c   : > { %s1465_s17 = sshll.u32 %s408_s15, 3  ;;  %s1025_s18 = sshll.u32 %s408_s15, 2 }
  0x3d   : > { %s413_s7 = scalar_lea.vmem %s1660_s1, %s1465_s17  ;;  %s423_s11 = scalar_lea.vmem %s1661_s2, %s1465_s17 }
  0x3e   : > { %s1478_s14 = scalar_lea.vmem %s1663_s4, %s1025_s18  ;;  %s443_s21 = scalar_lea.vmem %s1664_s5, %s1465_s17 }
  0x3f   : > { %s453_s15 = scalar_lea.vmem %s1665_s6, %s1465_s17 }
  0x42 PF: > { %p462_p7 = scmp.gt.s32.totalorder %s1311_s24, 0 }
  0x43   : > { %v467_v1 = vld [vmem:[#allocation3] sm:$0xff] (%p462_p7) }
  0x44   : > { %466 = sbr.rel (!%p462_p7) target bundleno = 75 (0x4b), region = 52  ;;  %468 = vst [vmem:[#allocation2] sm:$0xff] (%p462_p7), %v467_v1 }
  0x4b PF: > { %v477_v2 = vld [vmem:[%s1456_s29 + $0x8] sm:$0xff]  ;;  %v476_v4 = vld [vmem:[%s1456_s29] sm:$0xff]  ;;  %v479_v20 = vld [vmem:[%s1456_s29 + $0x18] sm:$0xff] }
  0x4c   : > { %v481_v3 = vld [vmem:[%s1456_s29 + $0x28] sm:$0xff]  ;;  %v480_v6 = vld [vmem:[%s1456_s29 + $0x20] sm:$0xff]  ;;  %v483_v21 = vld [vmem:[%s1456_s29 + $0x38] sm:$0xff] }
  0x4d   : > { %v1038_v5 = vpack.c.bf16 %v481_v3, %v477_v2  ;;  %v485_v7 = vld [vmem:[%s1456_s29 + $0x48] sm:$0xff]  ;;  %v1040_v9 = vpack.c.bf16 %v480_v6, %v476_v4  ;;  %v484_v11 = vld [vmem:[%s1456_s29 + $0x40] sm:$0xff]  ;;  %v1102_v23 = vpack.c.bf16 %v483_v21, %v479_v20  ;;  %v478_v24 = vld [vmem:[%s1456_s29 + $0x10] sm:$0xff] }
  0x4e   : > { %v489_v8 = vld [vmem:[%s1456_s29 + $0x68] sm:$0xff]  ;;  %v488_v12 = vld [vmem:[%s1456_s29 + $0x60] sm:$0xff]  ;;  %v482_v25 = vld [vmem:[%s1456_s29 + $0x30] sm:$0xff] }
  0x4f   : > { %v1042_v10 = vpack.c.bf16 %v489_v8, %v485_v7  ;;  %v493_v13 = vld [vmem:[%s1456_s29 + $0x88] sm:$0xff]  ;;  %1039 = vmatprep.subr.bf16.mxu0 %v1038_v5  ;;  %v1044_v15 = vpack.c.bf16 %v488_v12, %v484_v11  ;;  %v492_v16 = vld [vmem:[%s1456_s29 + $0x80] sm:$0xff]  ;;  %v1104_v26 = vpack.c.bf16 %v482_v25, %v478_v24  ;;  %1103 = vmatprep.subr.bf16.mxu1 %v1102_v23  ;;  %v487_v28 = vld [vmem:[%s1456_s29 + $0x58] sm:$0xff] }
  0x50   : > { %v497_v14 = vld [vmem:[%s1456_s29 + $0xa8] sm:$0xff]  ;;  %1041 = vmatpush1.bf16.msra.mxu0 %v1040_v9  ;;  %v496_v17 = vld [vmem:[%s1456_s29 + $0xa0] sm:$0xff]  ;;  %v491_v29 = vld [vmem:[%s1456_s29 + $0x78] sm:$0xff] }
  0x51   : > { %1043 = vmatprep.subr.bf16.mxu0 %v1042_v10  ;;  %v1046_v18 = vpack.c.bf16 %v497_v14, %v493_v13  ;;  %v501_v19 = vld [vmem:[%s1456_s29 + $0xc8] sm:$0xff]  ;;  %v1048_v27 = vpack.c.bf16 %v496_v17, %v492_v16  ;;  %v486_v30 = vld [vmem:[%s1456_s29 + $0x50] sm:$0xff]  ;;  %v500_v32 = vld [vmem:[%s1456_s29 + $0xc0] sm:$0xff]  ;;  %1105 = vmatpush1.bf16.msra.mxu1 %v1104_v26  ;;  %v1106_v34 = vpack.c.bf16 %v491_v29, %v487_v28 }
  0x52   : > { %v505_v22 = vld [vmem:[%s1456_s29 + $0xe8] sm:$0xff]  ;;  %v504_v33 = vld [vmem:[%s1456_s29 + $0xe0] sm:$0xff]  ;;  %v490_v35 = vld [vmem:[%s1456_s29 + $0x70] sm:$0xff] }
  0x53   : > { %v1050_v31 = vpack.c.bf16 %v505_v22, %v501_v19  ;;  %v509_v36 = vld [vmem:[%s1456_s29 + $0x108] sm:$0xff]  ;;  %v1108_v38 = vpack.c.bf16 %v490_v35, %v486_v30  ;;  %v495_v39 = vld [vmem:[%s1456_s29 + $0x98] sm:$0xff]  ;;  %1107 = vmatprep.subr.bf16.mxu1 %v1106_v34  ;;  %v494_v41 = vld [vmem:[%s1456_s29 + $0x90] sm:$0xff]  ;;  %v1052_v43 = vpack.c.bf16 %v504_v33, %v500_v32 }
  0x54   : > { %1045 = vmatpush1.bf16.msra.mxu0 %v1044_v15  ;;  %v513_v37 = vld [vmem:[%s1456_s29 + $0x128] sm:$0xff]  ;;  %v499_v40 = vld [vmem:[%s1456_s29 + $0xb8] sm:$0xff]  ;;  %v498_v42 = vld [vmem:[%s1456_s29 + $0xb0] sm:$0xff] }
  0x55   : > { %1047 = vmatprep.subr.bf16.mxu0 %v1046_v18  ;;  %v508_v44 = vld [vmem:[%s1456_s29 + $0x100] sm:$0xff]  ;;  %v1110_v46 = vpack.c.bf16 %v499_v40, %v495_v39  ;;  %v1054_v47 = vpack.c.bf16 %v513_v37, %v509_v36  ;;  %1109 = vmatpush1.bf16.msra.mxu1 %v1108_v38  ;;  %v517_v48 = vld [vmem:[%s1456_s29 + $0x148] sm:$0xff]  ;;  %v1112_v49 = vpack.c.bf16 %v498_v42, %v494_v41  ;;  %v503_v50 = vld [vmem:[%s1456_s29 + $0xd8] sm:$0xff] }
  0x56   : > { %v512_v45 = vld [vmem:[%s1456_s29 + $0x120] sm:$0xff]  ;;  %v507_v51 = vld [vmem:[%s1456_s29 + $0xf8] sm:$0xff]  ;;  %v521_v52 = vld [vmem:[%s1456_s29 + $0x168] sm:$0xff] }
  0x57   : > { %1111 = vmatprep.subr.bf16.mxu1 %v1110_v46  ;;  %v1114_v53 = vpack.c.bf16 %v507_v51, %v503_v50  ;;  %v502_v54 = vld [vmem:[%s1456_s29 + $0xd0] sm:$0xff]  ;;  %v1056_v56 = vpack.c.bf16 %v512_v45, %v508_v44  ;;  %v511_v57 = vld [vmem:[%s1456_s29 + $0x118] sm:$0xff]  ;;  %v1058_v59 = vpack.c.bf16 %v521_v52, %v517_v48  ;;  %v516_v60 = vld [vmem:[%s1456_s29 + $0x140] sm:$0xff] }
  0x58   : > { %1049 = vmatpush1.bf16.msra.mxu0 %v1048_v27  ;;  %v506_v55 = vld [vmem:[%s1456_s29 + $0xf0] sm:$0xff]  ;;  %v515_v58 = vld [vmem:[%s1456_s29 + $0x138] sm:$0xff]  ;;  %v520_v61 = vld [vmem:[%s1456_s29 + $0x160] sm:$0xff] }
  0x59   : > { %1051 = vmatprep.subr.bf16.mxu0 %v1050_v31  ;;  %1113 = vmatpush1.bf16.msra.mxu1 %v1112_v49  ;;  %v525_v62 = vld [vmem:[%s1456_s29 + $0x188] sm:$0xff]  ;;  %v1116_v63 = vpack.c.bf16 %v506_v55, %v502_v54  ;;  %v1118_v1 = vpack.c.bf16 %v515_v58, %v511_v57  ;;  %v510_v2 = vld [vmem:[%s1456_s29 + $0x110] sm:$0xff]  ;;  %v519_v4 = vld [vmem:[%s1456_s29 + $0x158] sm:$0xff]  ;;  %v1060_v6 = vpack.c.bf16 %v520_v61, %v516_v60 }
  0x5a   : > { %v529_v0 = vld [vmem:[%s1456_s29 + $0x1a8] sm:$0xff]  ;;  %1115 = vmatprep.subr.bf16.mxu1 %v1114_v53  ;;  %v514_v3 = vld [vmem:[%s1456_s29 + $0x130] sm:$0xff]  ;;  %v523_v5 = vld [vmem:[%s1456_s29 + $0x178] sm:$0xff] }
  0x5b   : > { %v1062_v7 = vpack.c.bf16 %v529_v0, %v525_v62  ;;  %v524_v8 = vld [vmem:[%s1456_s29 + $0x180] sm:$0xff]  ;;  %v533_v10 = vld [vmem:[%s1456_s29 + $0x1c8] sm:$0xff]  ;;  %v1120_v11 = vpack.c.bf16 %v514_v3, %v510_v2  ;;  %v1122_v13 = vpack.c.bf16 %v523_v5, %v519_v4  ;;  %v518_v14 = vld [vmem:[%s1456_s29 + $0x150] sm:$0xff] }
  0x5c   : > { %1053 = vmatpush1.bf16.msra.mxu0 %v1052_v43  ;;  %v528_v9 = vld [vmem:[%s1456_s29 + $0x1a0] sm:$0xff]  ;;  %v537_v12 = vld [vmem:[%s1456_s29 + $0x1e8] sm:$0xff]  ;;  %v522_v15 = vld [vmem:[%s1456_s29 + $0x170] sm:$0xff] }
  0x5d   : > { %1055 = vmatprep.subr.bf16.mxu0 %v1054_v47  ;;  %1117 = vmatpush1.bf16.msra.mxu1 %v1116_v63  ;;  %v527_v16 = vld [vmem:[%s1456_s29 + $0x198] sm:$0xff]  ;;  %v1064_v18 = vpack.c.bf16 %v528_v9, %v524_v8  ;;  %v1066_v19 = vpack.c.bf16 %v537_v12, %v533_v10  ;;  %v532_v20 = vld [vmem:[%s1456_s29 + $0x1c0] sm:$0xff]  ;;  %v541_v22 = vld [vmem:[%s1456_s29 + $0x208] sm:$0xff]  ;;  %v1124_v23 = vpack.c.bf16 %v522_v15, %v518_v14 }
  0x5e   : > { %1119 = vmatprep.subr.bf16.mxu1 %v1118_v1  ;;  %v531_v17 = vld [vmem:[%s1456_s29 + $0x1b8] sm:$0xff]  ;;  %v536_v21 = vld [vmem:[%s1456_s29 + $0x1e0] sm:$0xff]  ;;  %v545_v24 = vld [vmem:[%s1456_s29 + $0x228] sm:$0xff] }
  0x5f   : > { %v1126_v25 = vpack.c.bf16 %v531_v17, %v527_v16  ;;  %v526_v26 = vld [vmem:[%s1456_s29 + $0x190] sm:$0xff]  ;;  %v535_v28 = vld [vmem:[%s1456_s29 + $0x1d8] sm:$0xff]  ;;  %v1068_v30 = vpack.c.bf16 %v536_v21, %v532_v20  ;;  %v1070_v31 = vpack.c.bf16 %v545_v24, %v541_v22  ;;  %v540_v32 = vld [vmem:[%s1456_s29 + $0x200] sm:$0xff] }
  0x60   : > { %1057 = vmatpush1.bf16.msra.mxu0 %v1056_v56  ;;  %v530_v27 = vld [vmem:[%s1456_s29 + $0x1b0] sm:$0xff]  ;;  %v539_v29 = vld [vmem:[%s1456_s29 + $0x1f8] sm:$0xff]  ;;  %v544_v33 = vld [vmem:[%s1456_s29 + $0x220] sm:$0xff] }
  0x61   : > { %1059 = vmatprep.subr.bf16.mxu0 %v1058_v59  ;;  %1121 = vmatpush1.bf16.msra.mxu1 %v1120_v11  ;;  %v549_v34 = vld [vmem:[%s1456_s29 + $0x248] sm:$0xff]  ;;  %v1128_v35 = vpack.c.bf16 %v530_v27, %v526_v26  ;;  %v1130_v37 = vpack.c.bf16 %v539_v29, %v535_v28  ;;  %v534_v38 = vld [vmem:[%s1456_s29 + $0x1d0] sm:$0xff]  ;;  %v543_v40 = vld [vmem:[%s1456_s29 + $0x218] sm:$0xff]  ;;  %v1072_v42 = vpack.c.bf16 %v544_v33, %v540_v32 }
  0x62   : > { %1123 = vmatprep.subr.bf16.mxu1 %v1122_v13  ;;  %v553_v36 = vld [vmem:[%s1456_s29 + $0x268] sm:$0xff]  ;;  %v538_v39 = vld [vmem:[%s1456_s29 + $0x1f0] sm:$0xff]  ;;  %v547_v41 = vld [vmem:[%s1456_s29 + $0x238] sm:$0xff] }
  0x63   : > { %v1074_v43 = vpack.c.bf16 %v553_v36, %v549_v34  ;;  %v548_v44 = vld [vmem:[%s1456_s29 + $0x240] sm:$0xff]  ;;  %v557_v46 = vld [vmem:[%s1456_s29 + $0x288] sm:$0xff]  ;;  %v1132_v47 = vpack.c.bf16 %v538_v39, %v534_v38  ;;  %v1134_v49 = vpack.c.bf16 %v547_v41, %v543_v40  ;;  %v542_v50 = vld [vmem:[%s1456_s29 + $0x210] sm:$0xff] }
  0x64   : > { %1061 = vmatpush1.bf16.msra.mxu0 %v1060_v6  ;;  %v552_v45 = vld [vmem:[%s1456_s29 + $0x260] sm:$0xff]  ;;  %v561_v48 = vld [vmem:[%s1456_s29 + $0x2a8] sm:$0xff]  ;;  %v546_v51 = vld [vmem:[%s1456_s29 + $0x230] sm:$0xff] }
  0x65   : > { %1063 = vmatprep.subr.bf16.mxu0 %v1062_v7  ;;  %1125 = vmatpush1.bf16.msra.mxu1 %v1124_v23  ;;  %v551_v52 = vld [vmem:[%s1456_s29 + $0x258] sm:$0xff]  ;;  %v1076_v54 = vpack.c.bf16 %v552_v45, %v548_v44  ;;  %v556_v55 = vld [vmem:[%s1456_s29 + $0x280] sm:$0xff]  ;;  %v1078_v56 = vpack.c.bf16 %v561_v48, %v557_v46  ;;  %v565_v58 = vld [vmem:[%s1456_s29 + $0x2c8] sm:$0xff]  ;;  %v1136_v60 = vpack.c.bf16 %v546_v51, %v542_v50 }
  0x66   : > { %1127 = vmatprep.subr.bf16.mxu1 %v1126_v25  ;;  %v555_v53 = vld [vmem:[%s1456_s29 + $0x278] sm:$0xff]  ;;  %v560_v57 = vld [vmem:[%s1456_s29 + $0x2a0] sm:$0xff]  ;;  %v569_v59 = vld [vmem:[%s1456_s29 + $0x2e8] sm:$0xff] }
  0x67   : > { %v1138_v61 = vpack.c.bf16 %v555_v53, %v551_v52  ;;  %v550_v62 = vld [vmem:[%s1456_s29 + $0x250] sm:$0xff]  ;;  %v472_v0 = vld [vmem:[%s413_s7] sm:$0xff]  ;;  %v559_v1 = vld [vmem:[%s1456_s29 + $0x298] sm:$0xff]  ;;  %v1080_v3 = vpack.c.bf16 %v560_v57, %v556_v55  ;;  %v1082_v4 = vpack.c.bf16 %v569_v59, %v565_v58 }
  0x68   : > { %1065 = vmatpush1.bf16.msra.mxu0 %v1064_v18  ;;  %v554_v63 = vld [vmem:[%s1456_s29 + $0x270] sm:$0xff]  ;;  %v563_v2 = vld [vmem:[%s1456_s29 + $0x2b8] sm:$0xff]  ;;  %690 = vmatprep.mubr.f32.mxu0 %v472_v0  ;;  %v564_v5 = vld [vmem:[%s1456_s29 + $0x2c0] sm:$0xff] }
  0x69   : > { %1067 = vmatprep.subr.bf16.mxu0 %v1066_v19  ;;  %1129 = vmatpush1.bf16.msra.mxu1 %v1128_v35  ;;  %v568_v6 = vld [vmem:[%s1456_s29 + $0x2e0] sm:$0xff]  ;;  %v573_v7 = vld [vmem:[%s1456_s29 + $0x308] sm:$0xff]  ;;  %v1140_v8 = vpack.c.bf16 %v554_v63, %v550_v62  ;;  %v1142_v10 = vpack.c.bf16 %v563_v2, %v559_v1  ;;  %v558_v11 = vld [vmem:[%s1456_s29 + $0x290] sm:$0xff] }
  0x6a   : > { %1131 = vmatprep.subr.bf16.mxu1 %v1130_v37  ;;  %761 = vmatprep.mubr.f32.mxu1 %v472_v0  ;;  %v577_v9 = vld [vmem:[%s1456_s29 + $0x328] sm:$0xff]  ;;  %v562_v12 = vld [vmem:[%s1456_s29 + $0x2b0] sm:$0xff]  ;;  %v567_v13 = vld [vmem:[%s1456_s29 + $0x2d8] sm:$0xff]  ;;  %v1084_v15 = vpack.c.bf16 %v568_v6, %v564_v5 }
  0x6b   : > { %v571_v14 = vld [vmem:[%s1456_s29 + $0x2f8] sm:$0xff]  ;;  %v1086_v16 = vpack.c.bf16 %v577_v9, %v573_v7  ;;  %v572_v17 = vld [vmem:[%s1456_s29 + $0x300] sm:$0xff]  ;;  %v581_v19 = vld [vmem:[%s1456_s29 + $0x348] sm:$0xff]  ;;  %v1144_v20 = vpack.c.bf16 %v562_v12, %v558_v11 }
  0x6c   : > { %1069 = vmatpush1.bf16.msra.mxu0 %v1068_v30  ;;  %v576_v18 = vld [vmem:[%s1456_s29 + $0x320] sm:$0xff]  ;;  %v585_v21 = vld [vmem:[%s1456_s29 + $0x368] sm:$0xff]  ;;  %v1146_v22 = vpack.c.bf16 %v571_v14, %v567_v13  ;;  %v566_v23 = vld [vmem:[%s1456_s29 + $0x2d0] sm:$0xff] }
  0x6d   : > { %1071 = vmatprep.subr.bf16.mxu0 %v1070_v31  ;;  %1133 = vmatpush1.bf16.msra.mxu1 %v1132_v47  ;;  %v570_v24 = vld [vmem:[%s1456_s29 + $0x2f0] sm:$0xff]  ;;  %v575_v25 = vld [vmem:[%s1456_s29 + $0x318] sm:$0xff]  ;;  %v1088_v27 = vpack.c.bf16 %v576_v18, %v572_v17  ;;  %v1090_v28 = vpack.c.bf16 %v585_v21, %v581_v19  ;;  %v580_v29 = vld [vmem:[%s1456_s29 + $0x340] sm:$0xff] }
  0x6e   : > { %1135 = vmatprep.subr.bf16.mxu1 %v1134_v49  ;;  %v579_v26 = vld [vmem:[%s1456_s29 + $0x338] sm:$0xff]  ;;  %v584_v30 = vld [vmem:[%s1456_s29 + $0x360] sm:$0xff]  ;;  %v589_v31 = vld [vmem:[%s1456_s29 + $0x388] sm:$0xff]  ;;  %v1148_v32 = vpack.c.bf16 %v570_v24, %v566_v23 }
  0x6f   : > { %v593_v33 = vld [vmem:[%s1456_s29 + $0x3a8] sm:$0xff]  ;;  %v1150_v34 = vpack.c.bf16 %v579_v26, %v575_v25  ;;  %v574_v35 = vld [vmem:[%s1456_s29 + $0x310] sm:$0xff]  ;;  %v583_v37 = vld [vmem:[%s1456_s29 + $0x358] sm:$0xff]  ;;  %v1092_v39 = vpack.c.bf16 %v584_v30, %v580_v29 }
  0x70   : > { %1073 = vmatpush1.bf16.msra.mxu0 %v1072_v42  ;;  %v578_v36 = vld [vmem:[%s1456_s29 + $0x330] sm:$0xff]  ;;  %v587_v38 = vld [vmem:[%s1456_s29 + $0x378] sm:$0xff]  ;;  %v1094_v40 = vpack.c.bf16 %v593_v33, %v589_v31  ;;  %v588_v41 = vld [vmem:[%s1456_s29 + $0x380] sm:$0xff] }
  0x71   : > { %1075 = vmatprep.subr.bf16.mxu0 %v1074_v43  ;;  %1137 = vmatpush1.bf16.msra.mxu1 %v1136_v60  ;;  %v592_v42 = vld [vmem:[%s1456_s29 + $0x3a0] sm:$0xff]  ;;  %v597_v43 = vld [vmem:[%s1456_s29 + $0x3c8] sm:$0xff]  ;;  %v1152_v44 = vpack.c.bf16 %v578_v36, %v574_v35  ;;  %v1154_v46 = vpack.c.bf16 %v587_v38, %v583_v37  ;;  %v582_v47 = vld [vmem:[%s1456_s29 + $0x350] sm:$0xff] }
  0x72   : > { %1139 = vmatprep.subr.bf16.mxu1 %v1138_v61  ;;  %v601_v45 = vld [vmem:[%s1456_s29 + $0x3e8] sm:$0xff]  ;;  %v586_v48 = vld [vmem:[%s1456_s29 + $0x370] sm:$0xff]  ;;  %v591_v49 = vld [vmem:[%s1456_s29 + $0x398] sm:$0xff]  ;;  %v1096_v51 = vpack.c.bf16 %v592_v42, %v588_v41 }
  0x73   : > { %v595_v50 = vld [vmem:[%s1456_s29 + $0x3b8] sm:$0xff]  ;;  %v1098_v52 = vpack.c.bf16 %v601_v45, %v597_v43  ;;  %v596_v53 = vld [vmem:[%s1456_s29 + $0x3c0] sm:$0xff]  ;;  %v1156_v55 = vpack.c.bf16 %v586_v48, %v582_v47  ;;  %v590_v57 = vld [vmem:[%s1456_s29 + $0x390] sm:$0xff] }
  0x74   : > { %1077 = vmatpush1.bf16.msra.mxu0 %v1076_v54  ;;  %v600_v54 = vld [vmem:[%s1456_s29 + $0x3e0] sm:$0xff]  ;;  %v594_v58 = vld [vmem:[%s1456_s29 + $0x3b0] sm:$0xff]  ;;  %v599_v59 = vld [vmem:[%s1456_s29 + $0x3d8] sm:$0xff] }
  0x75   : > { %1079 = vmatprep.subr.bf16.mxu0 %v1078_v56  ;;  %1141 = vmatpush1.bf16.msra.mxu1 %v1140_v8  ;;  %v1158_v56 = vpack.c.bf16 %v595_v50, %v591_v49  ;;  %v603_v60 = vld [vmem:[%s1456_s29 + $0x3f8] sm:$0xff]  ;;  %v1100_v61 = vpack.c.bf16 %v600_v54, %v596_v53  ;;  %v1160_v62 = vpack.c.bf16 %v594_v58, %v590_v57  ;;  %v598_v0 = vld [vmem:[%s1456_s29 + $0x3d0] sm:$0xff]  ;;  %v474_v2 = vld [vmem:[#allocation2] sm:$0xff] }
  0x76   : > { %1143 = vmatprep.subr.bf16.mxu1 %v1142_v10  ;;  %v1162_v63 = vpack.c.bf16 %v603_v60, %v599_v59  ;;  %v602_v1 = vld [vmem:[%s1456_s29 + $0x3f0] sm:$0xff]  ;;  %v604_v7 = vld [vmem:[%s1478_s14] sm:$0xf] }
  0x78   : > { %1081 = vmatpush1.bf16.msra.mxu0 %v1080_v3  ;;  %v1164_v3 = vpack.c.bf16 %v602_v1, %v598_v0 }
  0x79   : > { %1083 = vmatprep.subr.bf16.mxu0 %v1082_v4  ;;  %1145 = vmatpush1.bf16.msra.mxu1 %v1144_v20  ;;  %v606_v4 = vlaneseq }
  0x7a   : > { %1147 = vmatprep.subr.bf16.mxu1 %v1146_v22 }
  0x7b   : > { %v607_v5 = vshrl.u32 %v606_v4, 7 }
  0x7c   : > { %1085 = vmatpush1.bf16.msra.mxu0 %v1084_v15 }
  0x7d   : > { %1087 = vmatprep.subr.bf16.mxu0 %v1086_v16  ;;  %1149 = vmatpush1.bf16.msra.mxu1 %v1148_v32  ;;  %v608_v6 = vsub.s32 0, %v607_v5  ;;  %v612_v8 = vsub.s32 1, %v607_v5  ;;  %v620_v11 = vsub.s32 3, %v607_v5  ;;  %v616_v19 = vsub.s32 2, %v607_v5  ;;  %v787_v32 = vld [vmem:[%s423_s11] sm:$0xff] }
  0x7e   : > { %1151 = vmatprep.subr.bf16.mxu1 %v1150_v34 }
  0x7f   : > { %v609_v9 = vrot.slane %v604_v7, %v608_v6  ;;  %v613_v10 = vrot.slane %v604_v7, %v612_v8  ;;  %v621_v17 = vrot.slane %v604_v7, %v620_v11  ;;  %v617_v23 = vrot.slane %v604_v7, %v616_v19 }
  0x80   : > { %1089 = vmatpush1.bf16.msra.mxu0 %v1088_v27 }
  0x81   : > { %1091 = vmatprep.subr.bf16.mxu0 %v1090_v28  ;;  %1153 = vmatpush1.bf16.msra.mxu1 %v1152_v44 }
  0x82   : > { %1155 = vmatprep.subr.bf16.mxu1 %v1154_v46 }
  0x84   : > { %1093 = vmatpush1.bf16.msra.mxu0 %v1092_v39 }
  0x85   : > { %1095 = vmatprep.subr.bf16.mxu0 %v1094_v40  ;;  %1157 = vmatpush1.bf16.msra.mxu1 %v1156_v55 }
  0x86   : > { %1159 = vmatprep.subr.bf16.mxu1 %v1158_v56 }
  0x88   : > { %1097 = vmatpush1.bf16.msra.mxu0 %v1096_v51 }
  0x89   : > { %1099 = vmatprep.subr.bf16.mxu0 %v1098_v52  ;;  %1161 = vmatpush1.bf16.msra.mxu1 %v1160_v62 }
  0x8a   : > { %1163 = vmatprep.subr.bf16.mxu1 %v1162_v63 }
  0x8c   : > { %1101 = vmatpush1.bf16.msra.mxu0 %v1100_v61 }
  0x8d   : > { %1165 = vmatpush1.bf16.msra.mxu1 %v1164_v3 }
  0x8f   : > { %691 = vmatmul.mubr.f32.vlgmr.msra.gmra.mrb[0].mxu0 %v474_v2 }
  0x90   : > { %762 = vmatmul.mubr.f32.vlgmr.msra.gmra.mrb[0].mxu1 %v474_v2 }
 0x162   : > { %v692_v12 = vpop.f32.mrb[0].mxu0 }
 0x163   : > { %v693_v13 = vadd.f32 %v692_v12, %v609_v9  ;;  %v694_v14 = vpop.f32.mrb[1].mxu0  ;;  %v763_v20 = vpop.f32.mrb[0].mxu1 }
 0x164   : > { %v695_v15 = vadd.f32 %v694_v14, %v613_v10  ;;  %v765_v21 = vpop.f32.mrb[1].mxu1  ;;  %v764_v25 = vadd.f32 %v763_v20, %v617_v23 }
 0x165   : > { %v1030_v16 = vmul.f32 -1.442695, %v693_v13  ;;  %v766_v22 = vadd.f32 %v765_v21, %v621_v17 }
 0x166   : > { %v1031_v18 = vmul.f32 -1.442695, %v695_v15 }
 0x167   : > { %1223 = vpow2.f32 %v1030_v16  ;;  %v1032_v24 = vmul.f32 -1.442695, %v766_v22 }
 0x168   : > { %1225 = vpow2.f32 %v1031_v18 }
 0x169   : > { %1227 = vpow2.f32 %v1032_v24 }
 0x16a   : > { %1229 = vtanh.f32 %v764_v25 }
 0x171   : > { %v1224_v26 = vpop.eup %1223 }
 0x172   : > { %v1226_v27 = vpop.eup %1225  ;;  %v771_v28 = vadd.f32 1.0, %v1224_v26 }
 0x173   : > { %v777_v29 = vadd.f32 1.0, %v1226_v27  ;;  %v1228_v30 = vpop.eup %1227 }
 0x174   : > { %1231 = vrcp.f32 %v771_v28  ;;  %v1230_v31 = vpop.eup %1229  ;;  %v784_v34 = vadd.f32 1.0, %v1228_v30 }
 0x175   : > { %1233 = vrcp.f32 %v777_v29 }
 0x176   : > { %1235 = vrcp.f32 %v784_v34 }
 0x17e   : > { %v1232_v33 = vpop.eup %1231 }
 0x17f   : > { %v1234_v35 = vpop.eup %1233  ;;  %v789_v36 = vmul.f32 %v1232_v33, %v1230_v31 }
 0x180   : > { %v788_v37 = vmul.f32 %v1234_v35, %v787_v32  ;;  %v1236_v39 = vpop.eup %1235 }
 0x182   : > { %v790_v38 = vadd.f32 %v789_v36, %v788_v37 }
 0x184   : > { %1237 = vtanh.f32 %v790_v38  ;;  %793 = vst [vmem:[%s453_s15] sm:$0xff] %v790_v38 }
 0x18e   : > { %v1238_v40 = vpop.eup %1237 }
 0x18f   : > { %v792_v41 = vmul.f32 %v1238_v40, %v1236_v39 }
 0x191   : > { %794 = vst [vmem:[%s443_s21] sm:$0xff] %v792_v41  ;;  %797 = vst [vmem:[#allocation3] sm:$0xff] %v792_v41 }
 0x192 PF: > { %s20_s26 = sadd.s32 1, %s1319_s26   ;;  %s1671_s21 = smov %s1303_s22 }
 0x193   : > { %p17_p5 = scmp.ge.s32.totalorder %s20_s26, 4   ;;  %s1672_s22 = smov %s1307_s23 }
 0x194   : > { %s1673_s23 = smov %s1408_s9  ;;  %s1674_s24 = smov %s1315_s25 }
 0x195   : > { %s1675_s25 = smov %s1677_s28  ;;  %19 = sbr.rel (!%p17_p5) target bundleno = 6 (0x6), region = 117 }
 0x19c   :  { %855 = vsyncpa [#allocation5], 1 }
 0x19d   :  { %857 = vsyncpa [#allocation5 + $0x1], 1 }

</bundles_post_ra>
